<compile_context>
chip_gen: v6e
topology: v6e:2x2x1
jax: 0.10.0
libtpu: 0.0.40
codegen_flags: <defaults>
</compile_context>

<pallas_src>
import math

import jax
import jax.numpy as jnp
import numpy as np
from jax.experimental import pallas as pl
from jax.experimental.pallas import tpu as pltpu

# TODO(synk): cv2.ximgproc selective-search segmentation (region merging) has
# no Pallas equivalent; candidate rects are generated synthetically instead.

MAX_PROPOSALS = 2000   # the `[:2000]` cap in _select_candidate_regions
LANE_TILE = 1024       # 8 sublanes x 128 lanes -> lane-dense (8, L) slabs


def _keep_kernel(lohi_ref, w_ref, h_ref, keep_ref):
    """Keep mask for every candidate rect (single grid step, whole array).

    lohi_ref: (2,)   int32 SMEM  -- [lo, hi] integer area thresholds
    w_ref   : (8, L) int32 VMEM  -- widths,  lane-dense slab
    h_ref   : (8, L) int32 VMEM  -- heights, lane-dense slab
    keep_ref: (8, L) int32 VMEM  -- 1 = keep, 0 = drop
    """
    lo = lohi_ref[0]
    hi = lohi_ref[1]
    area = w_ref[...] * h_ref[...]                        # exact int32 area (VPU)
    # keep = not (area >= 0.05*W*H and area <= 0.5*W*H)
    #      = (area < lo) or (area > hi),  lo = ceil(0.05*W*H), hi = floor(0.5*W*H)
    keep_ref[...] = jnp.logical_or(area < lo, area > hi).astype(jnp.int32)


def keep_pallas(lohi, w_slab, h_slab):
    """lohi: (2,) int32; w_slab/h_slab: (8, L) int32 -> (8, L) int32 keep mask."""
    s, l = w_slab.shape
    return pl.pallas_call(
        _keep_kernel,
        out_shape=jax.ShapeDtypeStruct((s, l), jnp.int32),
        in_specs=[
            pl.BlockSpec(memory_space=pltpu.MemorySpace.SMEM),   # [lo, hi] scalars
            pl.BlockSpec(memory_space=pltpu.MemorySpace.VMEM),   # w slab
            pl.BlockSpec(memory_space=pltpu.MemorySpace.VMEM),   # h slab
        ],
        out_specs=pl.BlockSpec(memory_space=pltpu.MemorySpace.VMEM),
    )(lohi, w_slab, h_slab)


def selective_search_forward(im, rects):
    """JAX equivalent of SelectiveSearch.forward given pre-computed rects.

    im   : (H, W, C) image (only its static shape is used by the filter)
    rects: (N, 4) int32 rects [x, y, w, h]
    returns: (MAX_PROPOSALS, 4) int32 padded rects, and the valid count.
    """
    H, W = im.shape[0], im.shape[1]
    n = rects.shape[0]
    rects_i = rects.astype(jnp.int32)

    # Exact integer thresholds reproducing the module's float comparisons
    # (area is an integer):
    #   area >= 0.05*W*H  <=>  area >= ceil(0.05*W*H)
    #   area <= 0.5 *W*H  <=>  area <= floor(0.5*W*H)
    wh = W * H
    lo = int(math.ceil(0.05 * wh))
    hi = int(math.floor(0.5 * wh))
    lohi = jnp.array([lo, hi], dtype=jnp.int32)

    # Pad N to a multiple of 1024 so the (8, L) slabs have L % 128 == 0
    # (lane-dense, unmasked vector stores).  Only the w / h columns are fed to
    # the kernel; no (N,4)->(4,N) transpose is materialized.
    n_pad = ((n + LANE_TILE - 1) // LANE_TILE) * LANE_TILE
    pad = n_pad - n
    L = n_pad // 8
    w_slab = jnp.pad(rects_i[:, 2], (0, pad)).reshape(8, L)
    h_slab = jnp.pad(rects_i[:, 3], (0, pad)).reshape(8, L)

    keep = keep_pallas(lohi, w_slab, h_slab)              # (8, L) int32
    keep_flat = keep.reshape(n_pad)[:n]                   # padding dropped here

    # Order-preserving compaction, fully vectorized (no serialized scatter):
    # output slot j <- (j+1)-th kept rect, found via searchsorted on prefix sum.
    csum = jnp.cumsum(keep_flat)                          # (n,) inclusive prefix sum
    n_valid = jnp.minimum(csum[-1], MAX_PROPOSALS)
    slots = jnp.arange(MAX_PROPOSALS, dtype=jnp.int32)
    src = jnp.searchsorted(csum, slots + 1, side="left")  # (2000,) source rows
    src = jnp.minimum(src, n - 1).astype(jnp.int32)
    selected = jnp.where((slots < n_valid)[:, None], rects_i[src], 0)
    return selected, n_valid


def _make_synthetic_proposals(key, H, W, n):
    """Deterministic stand-in for cv2 selective-search `process()`."""
    kx, ky, kw, kh = jax.random.split(key, 4)
    w = jax.random.randint(kw, (n,), 1, W + 1, dtype=jnp.int32)
    h = jax.random.randint(kh, (n,), 1, H + 1, dtype=jnp.int32)
    x = jax.random.randint(kx, (n,), 0, W, dtype=jnp.int32)
    y = jax.random.randint(ky, (n,), 0, H, dtype=jnp.int32)
    return jnp.stack([x, y, w, h], axis=1)                # (n, 4)


if __name__ == "__main__":
    key = jax.random.PRNGKey(0)
    k_im, k_rect = jax.random.split(key)

    H, W, C = 32, 32, 3                                   # OpenCV-style HWC image
    N = 2048                                              # synthetic proposal count
    im = jax.random.uniform(k_im, (H, W, C), dtype=jnp.float32)
    rects = _make_synthetic_proposals(k_rect, H, W, N)

    selected, n_valid = jax.jit(selective_search_forward)(im, rects)
    selected = jax.block_until_ready(selected)
    n_valid = jax.block_until_ready(n_valid)

    # Reference check with the module's float-threshold semantics.
    r = np.asarray(rects)
    area = r[:, 2].astype(np.float64) * r[:, 3].astype(np.float64)
    inside = (area >= 0.05 * W * H) & (area <= 0.5 * W * H)
    kept = r[~inside][:MAX_PROPOSALS].astype(np.int32)
    ref_count = kept.shape[0]
    ref_sel = np.zeros((MAX_PROPOSALS, 4), np.int32)
    ref_sel[:ref_count] = kept
    assert int(n_valid) == ref_count, (int(n_valid), ref_count)
    assert np.array_equal(np.asarray(selected), ref_sel)

    print("KERNEL_OK")
</pallas_src>

<mosaic_0001>
module attributes {stable_mosaic.version = 11 : i64} {
  func.func @_keep_kernel(%arg0: memref<2xi32, #tpu.memory_space<smem>>, %arg1: memref<8x256xi32, #tpu.memory_space<vmem>>, %arg2: memref<8x256xi32, #tpu.memory_space<vmem>>, %arg3: memref<8x256xi32, #tpu.memory_space<vmem>>) attributes {dimension_semantics = [], scalar_prefetch = 0 : i64, scratch_operands = 0 : i64, tpu.core_type = #tpu.core_type<tc>} {
    %c0 = arith.constant 0 : index
    %0 = memref.load %arg0[%c0] : memref<2xi32, #tpu.memory_space<smem>>
    %c1 = arith.constant 1 : index
    %1 = memref.load %arg0[%c1] : memref<2xi32, #tpu.memory_space<smem>>
    %c0_0 = arith.constant 0 : index
    %c0_1 = arith.constant 0 : index
    %2 = vector.load %arg1[%c0_0, %c0_1] : memref<8x256xi32, #tpu.memory_space<vmem>>, vector<8x256xi32>
    %c0_2 = arith.constant 0 : index
    %c0_3 = arith.constant 0 : index
    %3 = vector.load %arg2[%c0_2, %c0_3] : memref<8x256xi32, #tpu.memory_space<vmem>>, vector<8x256xi32>
    %4 = arith.muli %2, %3 : vector<8x256xi32>
    %5 = vector.broadcast %0 : i32 to vector<8x256xi32>
    %6 = arith.cmpi slt, %4, %5 : vector<8x256xi32>
    %7 = vector.broadcast %1 : i32 to vector<8x256xi32>
    %8 = arith.cmpi sgt, %4, %7 : vector<8x256xi32>
    %9 = arith.ori %6, %8 : vector<8x256xi1>
    %10 = arith.extui %9 : vector<8x256xi1> to vector<8x256xi32>
    %c0_4 = arith.constant 0 : index
    %c0_5 = arith.constant 0 : index
    %11 = vector.load %arg3[%c0_4, %c0_5] : memref<8x256xi32, #tpu.memory_space<vmem>>, vector<8x256xi32>
    tpu.vector_store %arg3[%c0_4, %c0_5], %10 {strides = array<i32>} : memref<8x256xi32, #tpu.memory_space<vmem>>, vector<8x256xi32>,
    return
  }
}

</mosaic_0001>

<bundles_post_ra>
// kernel: custom-call.1
= control target key start
LH: loop header
LB: loop body
LE: loop exit
PB: predicated region body
PF: predicated region fallthrough
CT: control target
= control target key end

     0   :  { %s6_s0 = inlined_call_operand.vmem [shape: u32[2000], index: 0, kind: output, shape index: {}]  }

// kernel: selective_search_forward.1
= control target key start
LH: loop header
LB: loop body
LE: loop exit
PB: predicated region body
PF: predicated region fallthrough
CT: control target
= control target key end

     0   :  { %8 = vsyncpa [#allocation3], 0  ;;  %s112_s0 = inlined_call_operand.vmem [shape: s32[2], index: 0, kind: input, shape index: {}]   ;;  %s113_s1 = inlined_call_operand.vmem [shape: s32[8,256], index: 1, kind: input, shape index: {}]   ;;  %s114_s2 = inlined_call_operand.vmem [shape: s32[8,256], index: 2, kind: input, shape index: {}]   ;;  %s115_s3 = inlined_call_operand.vmem [shape: s32[8,256], index: 3, kind: output, shape index: {}]  }
   0x1   :  { %s15_s14 = sshll.u32 %s112_s0, 4  ;;  %s16_s14 = int_to_ptr.vmem [resolvable:$true] %s15_s14 }
   0x2   :  { %s55_s15 = scalar_lea.vmem %s16_s14, 16  ;;  %p60_p1 = scmp.lt.s32.totalorder %s16_s14, %s16_s14 }
   0x3   :  { %p56_p0 = scmp.ne.s32.totalorder %s16_s14, %s55_s15  ;;  %p61_p2 = scmp.lt.s32.totalorder %s55_s15, %s55_s15 }
   0x5   :  { %p62_p3 = por %p61_p2, %p60_p1 }
   0x7   :  { %p63_p4 = pnand %p62_p3, %p56_p0 }
   0x9   :  { %66 = shalt.err (!%p63_p4)
}
   0xa   :  { %s69_s16 = smov [#allocation2]  }
   0xb   :  { %18 = dma.vmem_to_smem %s16_s14, 16, %s69_s16, [#allocation3]  }
   0xc   :  { %67 = dma.done.wait [#allocation3], 16  }
   0xd   :  { %68 = vsyncadd [#allocation3], 4294967280 }
   0xe   :  { %26 = sfence }
   0xf   :  { %s27_s17 = sld [smem:[#allocation2]]  ;;  %v29_v0 = vld [vmem:[%s113_s1] sm:$0xff]  ;;  %v30_v2 = vld [vmem:[%s113_s1 + $0x8] sm:$0xff]  ;;  %v70_v8 = vmov 0  }
  0x10   :  { %v31_v1 = vld [vmem:[%s114_s2] sm:$0xff]  ;;  %s52_s23 = sld [smem:[#allocation2 + $0x1]]  ;;  %v32_v3 = vld [vmem:[%s114_s2 + $0x8] sm:$0xff] }
  0x11   :  { %v33_v4 = vmul.u32 %v31_v1, %v29_v0  ;;  %v34_v5 = vmul.u32 %v32_v3, %v30_v2 }
  0x15   :  { %v35_v6 = vstv %s27_s17 }
  0x16   :  { %vm36_vm0 = vcmp.lt.s32.totalorder %v33_v4, %v35_v6  ;;  %v38_v7 = vstv %s52_s23  ;;  %vm37_vm1 = vcmp.lt.s32.totalorder %v34_v5, %v35_v6 }
  0x17   :  { %vm39_vm2 = vcmp.gt.s32.totalorder %v33_v4, %v38_v7  ;;  %vm40_vm3 = vcmp.gt.s32.totalorder %v34_v5, %v38_v7 }
  0x18   :  { %vm41_vm4 = vmor %vm36_vm0, %vm39_vm2 }
  0x19   :  { %v43_v9 = vsel %vm41_vm4, 1, %v70_v8  ;;  %vm42_vm5 = vmor %vm37_vm1, %vm40_vm3 }
  0x1a   :  { %45 = vst [vmem:[%s115_s3] sm:$0xff] %v43_v9  ;;  %v44_v10 = vsel %vm42_vm5, 1, %v70_v8 }
  0x1b   :  { %46 = vst [vmem:[%s115_s3 + $0x8] sm:$0xff] %v44_v10 }
  0x1c   :  { %51 = vsyncpa [#allocation3], 1 }

</bundles_post_ra>
